<compile_context>
chip_gen: v7x
topology: tpu7x:2x2x1
jax: 0.10.0
libtpu: 0.0.40
codegen_flags: <defaults>
</compile_context>

<pallas_src>
import functools

import jax
import jax.numpy as jnp
from jax.experimental import pallas as pl
from jax.experimental.pallas import tpu as pltpu

_MIB = 1024 * 1024


def _contrastive_loss_kernel(o1_ref, o2_ref, label_ref, out_ref, acc_ref, *,
                             margin, eps, batch_size, tile_b, tiles_per_core):
    c = pl.program_id(0)   # partial-sum / core index
    j = pl.program_id(1)   # batch-tile index within this partial

    @pl.when(j == 0)
    def _():
        acc_ref[...] = jnp.zeros_like(acc_ref)

    o1 = o1_ref[...].astype(jnp.float32)
    o2 = o2_ref[...].astype(jnp.float32)
    diff = o1 - o2 + eps                                     # (TB, D)
    d2 = jnp.sum(diff * diff, axis=-1, keepdims=True)        # (TB, 1)  XLU reduce
    d = jnp.sqrt(d2)                                         # (TB, 1)

    label = label_ref[...].astype(jnp.float32)               # (TB, 1)
    hinge = jnp.maximum(margin - d, 0.0)
    per_row = (1.0 - label) * d2 + label * (hinge * hinge)   # (TB, 1)

    # Only the last (partial) tile and clamped out-of-range tiles need the row
    # mask; interior tiles take the unmasked fast path.
    tile_idx = c * tiles_per_core + j
    row_start = tile_idx * tile_b
    is_full_tile = (row_start + tile_b) <= batch_size

    @pl.when(is_full_tile)
    def _():
        acc_ref[...] = acc_ref[...] + per_row

    @pl.when(jnp.logical_not(is_full_tile))
    def _():
        row = row_start + jax.lax.broadcasted_iota(jnp.int32, (tile_b, 1), 0)
        acc_ref[...] = acc_ref[...] + jnp.where(row < batch_size, per_row, 0.0)

    @pl.when(j == tiles_per_core - 1)
    def _():
        # One cross-sublane reduce per partial (not per step).
        out_ref[...] = jnp.sum(acc_ref[...], axis=(0, 1), keepdims=True)


def _chip_config():
    """Best-effort (tensorcores-per-device, physical VMEM bytes) lookup."""
    cores, vmem = 1, 64 * _MIB          # conservative defaults
    try:
        kind = jax.devices()[0].device_kind.lower()
    except Exception:
        kind = ""
    if ("v2" in kind) or ("v3" in kind):
        cores, vmem = 1, 16 * _MIB
    elif ("v5 lite" in kind) or ("v5lite" in kind) or ("v5e" in kind):
        cores, vmem = 1, 128 * _MIB
    elif "v6" in kind:                  # v6e: 1 TC, 128 MiB VMEM
        cores, vmem = 1, 128 * _MIB
    elif "v7" in kind:                  # v7x: 2 TCs, 64 MiB VMEM per TC
        cores, vmem = 2, 64 * _MIB
    elif ("v4" in kind) or ("v5p" in kind) or ("v5" in kind):
        cores, vmem = 2, 128 * _MIB     # megacore chips: 2 TCs per device
    try:                                # prefer exact number when queryable
        v = int(getattr(pltpu.get_tpu_info(), "vmem_capacity_bytes", 0))
        if 8 * _MIB <= v <= 512 * _MIB:
            vmem = v
    except Exception:
        pass
    return cores, vmem


def _budgets(vmem_bytes):
    """(pipeline-buffer byte budget, scoped vmem_limit_bytes) per chip class."""
    if vmem_bytes >= 100 * _MIB:        # v5e / v6e class (128 MiB physical)
        return 28 * _MIB, 64 * _MIB
    if vmem_bytes >= 48 * _MIB:         # v7x class (64 MiB physical per TC)
        return 20 * _MIB, 44 * _MIB
    return max(2 * _MIB, vmem_bytes // 4), max(4 * _MIB, vmem_bytes // 2)


def _choose_tile_b(B, D, budget_bytes):
    # Per-row VMEM cost of all pipeline-resident state (lane-padded):
    #   features: 2 inputs * 2 buffers * round_up(D,128) * 4 B
    #   label:    2 buffers * 128 lanes * 4 B  (lane-padded (tile_b,1) blocks)
    #   acc:      128 lanes * 4 B              ((tile_b,1) f32 accumulator)
    dp = max(128, ((D + 127) // 128) * 128)
    bytes_per_row = 16 * dp + 2 * 512 + 512
    tile_b = budget_bytes // bytes_per_row
    tile_b = max(8, (tile_b // 8) * 8)
    if tile_b >= B:
        return B            # single full-batch block (full-dim (8,128) exception)
    return tile_b


def contrastive_loss(output1, output2, label, margin=1.0, eps=1e-6, tile_b=None):
    """output1, output2: (B, D) float (f32 or bf16); label: (B,) in {0., 1.}.

    Returns the scalar contrastive loss, matching the PyTorch module forward.
    """
    B, D = output1.shape
    label2d = label.reshape(B, 1).astype(jnp.float32)
    # TODO(synk): for D not a multiple of 128, fold 128//D rows per lane-row (or
    # pad D) to avoid lane-padding waste; skipped here since a wrapper-side
    # pad/copy would add a full extra HBM pass to a bandwidth-bound kernel.

    num_cores, vmem_bytes = _chip_config()
    buf_budget, vmem_limit = _budgets(vmem_bytes)

    if tile_b is None:
        tile_b = _choose_tile_b(B, D, buf_budget)
    tile_b = int(min(tile_b, B))
    if tile_b < B:
        tile_b = max(8, (tile_b // 8) * 8)   # (8, 128) sublane constraint

    grid_b = pl.cdiv(B, tile_b)
    # Only split into 2 partial sums when the device really has 2 TensorCores
    # (v7x / v4 / v5p); on 1-TC v5e/v6e it would just serialize and waste a
    # clamped tile's worth of HBM traffic when grid_b is odd.
    num_partials = 2 if (num_cores >= 2 and grid_b >= 2) else 1
    tiles_per_core = pl.cdiv(grid_b, num_partials)
    max_tile = grid_b - 1

    def block_map(c, j):
        # Clamp logical tile index so out-of-range tiles re-read a valid block;
        # their rows are masked to zero inside the kernel.
        t = jnp.minimum(c * tiles_per_core + j, max_tile)
        return (t, 0)

    kernel = functools.partial(
        _contrastive_loss_kernel,
        margin=float(margin), eps=float(eps), batch_size=B,
        tile_b=tile_b, tiles_per_core=tiles_per_core)

    # TODO(synk): on v7x, verify with an xprof trace that the leading axis is
    # sharded across both TensorCores; if not, switch "parallel" to
    # pltpu.CORE_PARALLEL (or use pl.core_map with create_tensorcore_mesh).
    dim_sems = ("parallel", "arbitrary") if num_partials > 1 else ("arbitrary", "arbitrary")

    partials = pl.pallas_call(
        kernel,
        out_shape=jax.ShapeDtypeStruct((num_partials, 1), jnp.float32),
        grid_spec=pltpu.PrefetchScalarGridSpec(
            num_scalar_prefetch=0,
            grid=(num_partials, tiles_per_core),
            in_specs=[
                pl.BlockSpec((tile_b, D), block_map),
                pl.BlockSpec((tile_b, D), block_map),
                pl.BlockSpec((tile_b, 1), block_map),
            ],
            out_specs=pl.BlockSpec((1, 1), lambda c, j: (c, 0)),
            scratch_shapes=[pltpu.VMEM((tile_b, 1), jnp.float32)],
        ),
        compiler_params=pltpu.CompilerParams(
            dimension_semantics=dim_sems,
            vmem_limit_bytes=int(vmem_limit),
        ),
    )(output1, output2, label2d)

    return jnp.sum(partials) / B


def _reference_loss(output1, output2, label, margin=1.0, eps=1e-6):
    # Pure-JAX reference of the PyTorch forward (math in f32, like the kernel).
    o1 = output1.astype(jnp.float32)
    o2 = output2.astype(jnp.float32)
    d = jnp.sqrt(jnp.sum(jnp.square(o1 - o2 + eps), axis=-1))
    return jnp.mean(
        (1.0 - label) * jnp.square(d)
        + label * jnp.square(jnp.maximum(margin - d, 0.0)))


if __name__ == "__main__":
    key = jax.random.PRNGKey(0)
    k1, k2, k3, k4, k5, k6, k7, k8 = jax.random.split(key, 8)

    # 1) Small single-block case (batch of 8 embedding pairs, dim 32).
    B, D = 8, 32
    o1 = jax.random.normal(k1, (B, D), dtype=jnp.float32)
    o2 = jax.random.normal(k2, (B, D), dtype=jnp.float32)
    lab = jax.random.bernoulli(k3, 0.5, (B,)).astype(jnp.float32)
    loss = jax.block_until_ready(contrastive_loss(o1, o2, lab, margin=1.0))
    ref = jax.block_until_ready(_reference_loss(o1, o2, lab, margin=1.0))
    assert jnp.allclose(loss, ref, rtol=1e-5, atol=1e-5), (loss, ref)

    # 2) Multi-tile case with a partial (masked) last tile and forced tile_b=8.
    B2, D2 = 22, 32
    o1b = jax.random.normal(k4, (B2, D2), dtype=jnp.float32)
    o2b = jax.random.normal(k5, (B2, D2), dtype=jnp.float32)
    lb = jax.random.bernoulli(k6, 0.5, (B2,)).astype(jnp.float32)
    loss2 = jax.block_until_ready(contrastive_loss(o1b, o2b, lb, margin=2.0, tile_b=8))
    ref2 = jax.block_until_ready(_reference_loss(o1b, o2b, lb, margin=2.0))
    assert jnp.allclose(loss2, ref2, rtol=1e-5, atol=1e-5), (loss2, ref2)

    # 3) bf16 feature inputs (half the HBM traffic); math still done in f32.
    B3, D3 = 16, 256
    o1c = jax.random.normal(k7, (B3, D3), dtype=jnp.float32).astype(jnp.bfloat16)
    o2c = jax.random.normal(k8, (B3, D3), dtype=jnp.float32).astype(jnp.bfloat16)
    lc = jnp.arange(B3, dtype=jnp.float32) % 2.0
    loss3 = jax.block_until_ready(contrastive_loss(o1c, o2c, lc, margin=1.5))
    ref3 = jax.block_until_ready(_reference_loss(o1c, o2c, lc, margin=1.5))
    assert jnp.allclose(loss3, ref3, rtol=1e-4, atol=1e-4), (loss3, ref3)

    print("KERNEL_OK")
</pallas_src>

<mosaic_0001>
module attributes {stable_mosaic.version = 11 : i64} {
  func.func @_contrastive_loss_kernel(%arg0: i32, %arg1: i32, %arg2: memref<8x32xf32, #tpu.memory_space<vmem>>, %arg3: memref<8x32xf32, #tpu.memory_space<vmem>>, %arg4: memref<8x1xf32, #tpu.memory_space<vmem>>, %arg5: memref<1x1xf32, #tpu.memory_space<vmem>>, %arg6: memref<8x1xf32, #tpu.memory_space<vmem>>) attributes {dimension_semantics = [#tpu.dimension_semantics<arbitrary>, #tpu.dimension_semantics<arbitrary>], iteration_bounds = array<i64: 1, 1>, scalar_prefetch = 0 : i64, scratch_operands = 1 : i64, tpu.core_type = #tpu.core_type<tc>, window_params = [{transform_indices = @transform_0, window_bounds = array<i64: 8, 32>}, {transform_indices = @transform_1, window_bounds = array<i64: 8, 32>}, {transform_indices = @transform_2, window_bounds = array<i64: 8, 1>}, {transform_indices = @transform_3, window_bounds = array<i64: 1, 1>}]} {
    %c0_i32 = arith.constant 0 : i32
    %0 = arith.cmpi eq, %arg1, %c0_i32 : i32
    %1 = arith.extui %0 : i1 to i32
    %c0_i32_0 = arith.constant 0 : i32
    %2 = arith.cmpi ne, %1, %c0_i32_0 : i32
    scf.if %2 {
      %cst_16 = arith.constant 0.000000e+00 : f32
      %36 = vector.broadcast %cst_16 : f32 to vector<8x1xf32>
      %c0_17 = arith.constant 0 : index
      %c0_18 = arith.constant 0 : index
      %37 = vector.load %arg6[%c0_17, %c0_18] : memref<8x1xf32, #tpu.memory_space<vmem>>, vector<8x1xf32>
      tpu.vector_store %arg6[%c0_17, %c0_18], %36 {strides = array<i32>} : memref<8x1xf32, #tpu.memory_space<vmem>>, vector<8x1xf32>,
    } else {
    }
    %c0 = arith.constant 0 : index
    %c0_1 = arith.constant 0 : index
    %3 = vector.load %arg2[%c0, %c0_1] : memref<8x32xf32, #tpu.memory_space<vmem>>, vector<8x32xf32>
    %c0_2 = arith.constant 0 : index
    %c0_3 = arith.constant 0 : index
    %4 = vector.load %arg3[%c0_2, %c0_3] : memref<8x32xf32, #tpu.memory_space<vmem>>, vector<8x32xf32>
    %5 = arith.subf %3, %4 : vector<8x32xf32>
    %cst = arith.constant 9.99999997E-7 : f32
    %6 = vector.broadcast %cst : f32 to vector<8x32xf32>
    %7 = arith.addf %5, %6 : vector<8x32xf32>
    %8 = arith.mulf %7, %7 : vector<8x32xf32>
    %cst_4 = arith.constant dense<0.000000e+00> : vector<8xf32>
    %9 = vector.multi_reduction <add>, %8, %cst_4 [1] : vector<8x32xf32> to vector<8xf32>
    %10 = vector.shape_cast %9 : vector<8xf32> to vector<8x1xf32>
    %11 = math.sqrt %10 : vector<8x1xf32>
    %c0_5 = arith.constant 0 : index
    %c0_6 = arith.constant 0 : index
    %12 = vector.load %arg4[%c0_5, %c0_6] : memref<8x1xf32, #tpu.memory_space<vmem>>, vector<8x1xf32>
    %cst_7 = arith.constant 1.000000e+00 : f32
    %13 = vector.broadcast %cst_7 : f32 to vector<8x1xf32>
    %14 = arith.subf %13, %11 : vector<8x1xf32>
    %cst_8 = arith.constant 0.000000e+00 : f32
    %15 = vector.broadcast %cst_8 : f32 to vector<8x1xf32>
    %16 = arith.maximumf %14, %15 : vector<8x1xf32>
    %cst_9 = arith.constant 1.000000e+00 : f32
    %17 = vector.broadcast %cst_9 : f32 to vector<8x1xf32>
    %18 = arith.subf %17, %12 : vector<8x1xf32>
    %19 = arith.mulf %18, %10 : vector<8x1xf32>
    %20 = arith.mulf %16, %16 : vector<8x1xf32>
    %21 = arith.mulf %12, %20 : vector<8x1xf32>
    %22 = arith.addf %19, %21 : vector<8x1xf32>
    %c1_i32 = arith.constant 1 : i32
    %23 = arith.muli %arg0, %c1_i32 : i32
    %24 = arith.addi %23, %arg1 : i32
    %c8_i32 = arith.constant 8 : i32
    %25 = arith.muli %24, %c8_i32 : i32
    %c8_i32_10 = arith.constant 8 : i32
    %26 = arith.addi %25, %c8_i32_10 : i32
    %c8_i32_11 = arith.constant 8 : i32
    %27 = arith.cmpi sle, %26, %c8_i32_11 : i32
    %28 = arith.extui %27 : i1 to i32
    %c0_i32_12 = arith.constant 0 : i32
    %29 = arith.cmpi ne, %28, %c0_i32_12 : i32
    scf.if %29 {
      %c0_16 = arith.constant 0 : index
      %c0_17 = arith.constant 0 : index
      %36 = vector.load %arg6[%c0_16, %c0_17] : memref<8x1xf32, #tpu.memory_space<vmem>>, vector<8x1xf32>
      %37 = arith.addf %36, %22 : vector<8x1xf32>
      %c0_18 = arith.constant 0 : index
      %c0_19 = arith.constant 0 : index
      %38 = vector.load %arg6[%c0_18, %c0_19] : memref<8x1xf32, #tpu.memory_space<vmem>>, vector<8x1xf32>
      tpu.vector_store %arg6[%c0_18, %c0_19], %37 {strides = array<i32>} : memref<8x1xf32, #tpu.memory_space<vmem>>, vector<8x1xf32>,
    } else {
    }
    %true = arith.constant true
    %30 = arith.xori %27, %true : i1
    %31 = arith.extui %30 : i1 to i32
    %c0_i32_13 = arith.constant 0 : i32
    %32 = arith.cmpi ne, %31, %c0_i32_13 : i32
    scf.if %32 {
      %36 = tpu.iota {dimensions = array<i32: 0>} : vector<8x1xi32>
      %37 = vector.broadcast %25 : i32 to vector<8x1xi32>
      %38 = arith.addi %37, %36 : vector<8x1xi32>
      %c0_16 = arith.constant 0 : index
      %c0_17 = arith.constant 0 : index
      %39 = vector.load %arg6[%c0_16, %c0_17] : memref<8x1xf32, #tpu.memory_space<vmem>>, vector<8x1xf32>
      %c8_i32_18 = arith.constant 8 : i32
      %40 = vector.broadcast %c8_i32_18 : i32 to vector<8x1xi32>
      %41 = arith.cmpi slt, %38, %40 : vector<8x1xi32>
      %cst_19 = arith.constant 0.000000e+00 : f32
      %42 = vector.broadcast %cst_19 : f32 to vector<8x1xf32>
      %43 = arith.select %41, %22, %42 : vector<8x1xi1>, vector<8x1xf32>
      %44 = arith.addf %39, %43 : vector<8x1xf32>
      %c0_20 = arith.constant 0 : index
      %c0_21 = arith.constant 0 : index
      %45 = vector.load %arg6[%c0_20, %c0_21] : memref<8x1xf32, #tpu.memory_space<vmem>>, vector<8x1xf32>
      tpu.vector_store %arg6[%c0_20, %c0_21], %44 {strides = array<i32>} : memref<8x1xf32, #tpu.memory_space<vmem>>, vector<8x1xf32>,
    } else {
    }
    %c0_i32_14 = arith.constant 0 : i32
    %33 = arith.cmpi eq, %arg1, %c0_i32_14 : i32
    %34 = arith.extui %33 : i1 to i32
    %c0_i32_15 = arith.constant 0 : i32
    %35 = arith.cmpi ne, %34, %c0_i32_15 : i32
    scf.if %35 {
      %c0_16 = arith.constant 0 : index
      %c0_17 = arith.constant 0 : index
      %36 = vector.load %arg6[%c0_16, %c0_17] : memref<8x1xf32, #tpu.memory_space<vmem>>, vector<8x1xf32>
      %37 = vector.shape_cast %36 : vector<8x1xf32> to vector<1x8x1xf32>
      %cst_18 = arith.constant dense<0.000000e+00> : vector<1xf32>
      %38 = vector.multi_reduction <add>, %37, %cst_18 [1, 2] : vector<1x8x1xf32> to vector<1xf32>
      %39 = vector.shape_cast %38 : vector<1xf32> to vector<1x1x1xf32>
      %40 = vector.extract %39[0, 0, 0] : f32 from vector<1x1x1xf32>
      %41 = vector.broadcast %40 : f32 to vector<1x1xf32>
      %c0_19 = arith.constant 0 : index
      %c0_20 = arith.constant 0 : index
      %42 = vector.load %arg5[%c0_19, %c0_20] : memref<1x1xf32, #tpu.memory_space<vmem>>, vector<1x1xf32>
      tpu.vector_store %arg5[%c0_19, %c0_20], %41 {strides = array<i32>} : memref<1x1xf32, #tpu.memory_space<vmem>>, vector<1x1xf32>,
    } else {
    }
    return
  }
  func.func @transform_0(%arg0: i32, %arg1: i32) -> (i32, i32) {
    %c1_i32 = arith.constant 1 : i32
    %0 = arith.muli %arg0, %c1_i32 : i32
    %1 = arith.addi %0, %arg1 : i32
    %c0_i32 = arith.constant 0 : i32
    %2 = arith.minsi %1, %c0_i32 : i32
    %c0_i32_0 = arith.constant 0 : i32
    %c0_i32_1 = arith.constant 0 : i32
    return %2, %c0_i32_0 : i32, i32
  }
  func.func @transform_1(%arg0: i32, %arg1: i32) -> (i32, i32) {
    %c1_i32 = arith.constant 1 : i32
    %0 = arith.muli %arg0, %c1_i32 : i32
    %1 = arith.addi %0, %arg1 : i32
    %c0_i32 = arith.constant 0 : i32
    %2 = arith.minsi %1, %c0_i32 : i32
    %c0_i32_0 = arith.constant 0 : i32
    %c0_i32_1 = arith.constant 0 : i32
    return %2, %c0_i32_0 : i32, i32
  }
  func.func @transform_2(%arg0: i32, %arg1: i32) -> (i32, i32) {
    %c1_i32 = arith.constant 1 : i32
    %0 = arith.muli %arg0, %c1_i32 : i32
    %1 = arith.addi %0, %arg1 : i32
    %c0_i32 = arith.constant 0 : i32
    %2 = arith.minsi %1, %c0_i32 : i32
    %c0_i32_0 = arith.constant 0 : i32
    %c0_i32_1 = arith.constant 0 : i32
    return %2, %c0_i32_0 : i32, i32
  }
  func.func @transform_3(%arg0: i32, %arg1: i32) -> (i32, i32) {
    %c0_i32 = arith.constant 0 : i32
    %c0_i32_0 = arith.constant 0 : i32
    return %arg0, %c0_i32 : i32, i32
  }
}

</mosaic_0001>

<bundles_post_ra>
// kernel: tpu_custom_call.1
= control target key start
LH: loop header
LB: loop body
LE: loop exit
PB: predicated region body
PF: predicated region fallthrough
CT: control target
= control target key end

     0   :  { %8 = vsyncpa [#allocation4], 0  ;;  %s302_s0 = inlined_call_operand.vmem [shape: f32[8,32], index: 0, kind: input, shape index: {}]   ;;  %s303_s1 = inlined_call_operand.hbm [shape: f32[8,32], index: 1, kind: input, shape index: {}]   ;;  %s304_s2 = inlined_call_operand.vmem [shape: f32[8,1], index: 2, kind: input, shape index: {}]   ;;  %s305_s3 = inlined_call_operand.hbm [shape: f32[1,1], index: 3, kind: output, shape index: {}]  }
   0x1   :  { %9 = vsyncpa [#allocation5], 0  ;;  %s246_s12 = smov [#allocation3]   ;;  %s198_s16 = scalar_lea.hbm %s303_s1, 128 }
   0x2   :  { %s33_s13 = sshll.u32 %s246_s12, 4  ;;  %p199_p0 = scmp.ne.s32.totalorder %s303_s1, %s198_s16  ;;  %s34_s13 = int_to_ptr.vmem [resolvable:$true] %s33_s13 }
   0x3   :  { %p202_p1 = scmp.lt.u32.totalorder %s198_s16, %s303_s1 }
   0x5   :  { %p204_p2 = pnand %p202_p1, %p199_p0 }
   0x7   :  { %207 = shalt.err (!%p204_p2)
}
   0x8   :  { %s208_s21 = scalar_lea.vmem %s34_s13, 128  ;;  %p213_p4 = scmp.lt.s32.totalorder %s34_s13, %s34_s13 }
   0x9   :  { %p209_p3 = scmp.ne.s32.totalorder %s34_s13, %s208_s21  ;;  %p214_p5 = scmp.lt.s32.totalorder %s208_s21, %s208_s21 }
   0xb   :  { %p215_p6 = por %p214_p5, %p213_p4 }
   0xd   :  { %p216_p7 = pnand %p215_p6, %p209_p3 }
   0xf   :  { %219 = shalt.err (!%p216_p7)
}
  0x10   :  { %36 = dma.hbm_to_vmem [thread:$0]  %s303_s1, 128, %s34_s13, [#allocation4]  }
  0x11   :  { %242 = dma.done.wait [#allocation4], 128  }
  0x12   :  { %243 = vsyncadd [#allocation4], 4294967168  ;;  %v95_v0 = vld [vmem:[%s302_s0] sm:$0xff]  ;;  %v96_v1 = vld [vmem:[#allocation3] sm:$0xff]  ;;  %vm100_vm0 = vcmask 261120   ;;  %vm93_vm1 = vcmask 7168  }
  0x13   :  { %v97_v2 = vsub.f32 %v95_v0, %v96_v1  ;;  %v247_v6 = vmov 0.0   ;;  %v111_v12 = vld [vmem:[%s304_s2] sm:$0xff]  ;;  %s248_s2 = smov [#allocation6]   ;;  %vm160_vm4 = vcmask 0  }
  0x14   :  { %94 = vst.msk [vmem:[#allocation2] sm:$0xff] %vm93_vm1, %v247_v6  ;;  %v114_v15 = vsub.f32 1.0, %v111_v12  ;;  %s168_s26 = sshll.u32 %s248_s2, 4  ;;  %s169_s26 = int_to_ptr.vmem [resolvable:$true] %s168_s26 }
  0x15   :  { %v98_v3 = vadd.f32 1e-06, %v97_v2  ;;  %s220_s28 = scalar_lea.vmem %s169_s26, 16  ;;  %s224_s29 = scalar_lea.vmem %s169_s26, 32 }
  0x16   :  { %p221_p8 = scmp.ne.s32.totalorder %s169_s26, %s220_s28  ;;  %p225_p9 = scmp.lt.s32.totalorder %s169_s26, %s169_s26 }
  0x17   :  { %v99_v4 = vmul.f32 %v98_v3, %v98_v3  ;;  %p226_p10 = scmp.lt.s32.totalorder %s224_s29, %s220_s28 }
  0x19   :  { %v101_v5 = vsel %vm100_vm0, %v99_v4, 0.0  ;;  %p227_p11 = por %p226_p10, %p225_p9 }
  0x1a   :  { %102 = vadd.xlane.f32.xlu0 %v101_v5 }
  0x1b   :  { %v126_v20 = vld [vmem:[#allocation2] sm:$0xff]  ;;  %p228_p12 = pnand %p227_p11, %p221_p8 }
  0xa7   :  { %v103_v7 = vpop.xlane.xlu0 %102 }
  0xa8   :  { %196 = vrsqrt.f32 %v103_v7  ;;  %vm106_vm2 = vcmp.eq.f32.partialorder %v103_v7, inf  ;;  %v109_v10 = vand.u32 2147483648, %v103_v7  ;;  %vm108_vm3 = vcmp.eq.f32.partialorder %v103_v7, 0.0 }
  0xa9   :  { %v115_v18 = vmul.f32 %v114_v15, %v103_v7 }
  0xb2   :  { %v197_v8 = vpop.eup %196 }
  0xb3   :  { %v105_v9 = vmul.f32 %v197_v8, %v103_v7 }
  0xb5   :  { %v107_v11 = vsel %vm106_vm2, %v103_v7, %v105_v9 }
  0xb6   :  { %v110_v13 = vsel %vm108_vm3, %v109_v10, %v107_v11 }
  0xb7   :  { %v112_v14 = vsub.f32 1.0, %v110_v13 }
  0xb9   :  { %v113_v16 = vmax.f32 %v112_v14, 0.0 }
  0xbb   :  { %v116_v17 = vmul.f32 %v113_v16, %v113_v16 }
  0xbd   :  { %v117_v19 = vmul.f32 %v116_v17, %v111_v12 }
  0xbf   :  { %v118_v21 = vadd.f32 %v117_v19, %v115_v18 }
  0xc1   :  { %v127_v22 = vadd.f32 %v126_v20, %v118_v21 }
  0xc3   :  { %129 = vst.msk [vmem:[#allocation2] sm:$0xff] %vm93_vm1, %v127_v22 }
  0xca   :  { %v147_v23 = vld [vmem:[#allocation2] sm:$0xff] }
  0xcb   :  { %v149_v24 = vsel %vm93_vm1, %v147_v23, 0.0 }
  0xcc   :  { %150 = vadd.xlane.f32.xlu0 %v149_v24 }
 0x159   :  { %v151_v25 = vpop.xlane.xlu0 %150 }
 0x15a   :  { %v152_v26 = vrot.slane %v151_v25, 4 }
 0x15c   :  { %v153_v27 = vadd.f32 %v152_v26, %v151_v25 }
 0x15e   :  { %v154_v28 = vrot.slane %v153_v27, 2 }
 0x160   :  { %v155_v29 = vadd.f32 %v154_v28, %v153_v27 }
 0x162   :  { %v156_v30 = vrot.slane %v155_v29, 1 }
 0x164   :  { %v157_v31 = vadd.f32 %v156_v30, %v155_v29 }
 0x166   :  { %191 = vpush %v157_v31 }
 0x197   :  { %s192_s27 = spop %191 }
 0x198   :  { %v159_v32 = vstv %s192_s27 }
 0x199   :  { %161 = vst.msk [vmem:[#allocation6] sm:$0x1] %vm160_vm4, %v159_v32 }
 0x19a   :  { %231 = shalt.err (!%p228_p12)
}
 0x19b   :  { %s232_s5 = scalar_lea.hbm %s305_s3, 16 }
 0x19c   :  { %p233_p13 = scmp.ne.s32.totalorder %s305_s3, %s232_s5  ;;  %p236_p0 = scmp.lt.u32.totalorder %s232_s5, %s305_s3 }
 0x19e   :  { %p238_p1 = pnand %p236_p0, %p233_p13 }
 0x1a0   :  { %241 = shalt.err (!%p238_p1)
}
 0x1a1   :  { %171 = dma.vmem_to_hbm [thread:$0]  %s169_s26, 16, %s305_s3, [#allocation5]  }
 0x1a2   :  { %244 = dma.done.wait [#allocation5], 16  }
 0x1a3   :  { %245 = vsyncadd [#allocation5], 4294967280 }
 0x1a4   :  { %175 = vsyncpa [#allocation4], 1 }
 0x1a5   :  { %176 = vsyncpa [#allocation5], 1 }

</bundles_post_ra>
